<compile_context>
chip_gen: v5e
topology: v5e:2x2
jax: 0.10.0
libtpu: 0.0.40
codegen_flags: <defaults>
</compile_context>

<pallas_src>
import jax
import jax.numpy as jnp
from jax import lax
from jax.experimental import pallas as pl
from jax.experimental.pallas import tpu as pltpu

_BN_EPS = 1e-5


# ---------------------------------------------------------------------------
# VMEM / tiling policy
# ---------------------------------------------------------------------------
def _vmem_budget():
    """Return (vmem_limit_bytes, block_budget_bytes), generation-aware.

    limit  = physical VMEM / 2   (64 MiB on v5e/v6e, 32 MiB on v7x; fallback 32 MiB)
    budget = 75% of limit        (25% headroom for Mosaic internal scratch)
    """
    try:
        phys = int(pltpu.get_tpu_info().vmem_capacity_bytes)
    except Exception:  # not on TPU hardware / API unavailable -> conservative default
        phys = 64 * 1024 * 1024
    limit = phys // 2
    budget = (limit * 3) // 4
    return limit, budget


def _largest_aligned_divisor(dim, unit, cap):
    """Largest multiple-of-`unit` divisor of `dim` that is <= cap (always >= unit).

    Callers guarantee dim % unit == 0, so this never falls back to a giant full-extent block.
    """
    assert dim % unit == 0 and dim >= unit
    cap = max(unit, min(dim, cap))
    best = unit
    t = unit
    while t <= cap:
        if dim % t == 0:
            best = t
        t += unit
    return best


# ---------------------------------------------------------------------------
# Pallas kernels
# ---------------------------------------------------------------------------
def _bn_stats_kernel(x_ref, w_ref, sum_ref, sumsq_ref, psum_ref, psumsq_ref):
    """Pass 1: per-sample sum / sum-of-squares of y = conv1x1(x) (Cexp == 1).

    x_ref      : (C, T)   one (sample, spatial-tile) slab; channels on sublanes, spatial on lanes
    w_ref      : (C, 1)   un-scaled 1x1 conv weight
    sum_ref    : (1, 1)   per-sample output (resident across the spatial grid axis)
    sumsq_ref  : (1, 1)   per-sample output
    psum_ref   : (1, T)   VMEM per-lane partial accumulator (f32)
    psumsq_ref : (1, T)   VMEM per-lane partial accumulator (f32)
    """
    j = pl.program_id(1)

    @pl.when(j == 0)
    def _():
        psum_ref[...] = jnp.zeros_like(psum_ref)
        psumsq_ref[...] = jnp.zeros_like(psumsq_ref)

    # Degenerate 1x1 conv (single output channel): VPU multiply + sublane reduce, not MXU.
    # Explicit f32 accumulation (robust if x is ever bf16).
    y = jnp.sum(x_ref[...].astype(jnp.float32) * w_ref[...], axis=0, keepdims=True)  # (1, T)
    psum_ref[...] += y
    psumsq_ref[...] += y * y

    @pl.when(j == pl.num_programs(1) - 1)
    def _():
        sum_ref[...] = jnp.sum(psum_ref[...], axis=1, keepdims=True)
        sumsq_ref[...] = jnp.sum(psumsq_ref[...], axis=1, keepdims=True)


def _shortcut_apply_kernel(shift_ref, x_ref, w_ref, out_ref):
    """Pass 2: out = x + conv1x1(x) * scale + shift, with BN folded into (w*scale, shift).

    shift_ref : SMEM (1,)  shift = beta - mean * gamma * inv_std
    x_ref     : (C, T)
    w_ref     : (C, 1)     scaled weight = w * gamma * inv_std
    out_ref   : (C, T)
    """
    x = x_ref[...]
    r = jnp.sum(x.astype(jnp.float32) * w_ref[...], axis=0, keepdims=True) + shift_ref[0]  # (1, T)
    # residual broadcasts over the channel (sublane) axis, exactly as the PyTorch in-place add
    out_ref[...] = (x + r).astype(out_ref.dtype)


def _double_kernel(x_ref, out_ref):
    """Identity-shortcut path: blocks == Identity, residual == x  ->  out = x + x."""
    out_ref[...] = x_ref[...] + x_ref[...]


# ---------------------------------------------------------------------------
# Module wrapper
# ---------------------------------------------------------------------------
class ResidualBlockPallas:
    def __init__(self, in_dim, out_dim, expansion=1, downsampling=1, *, key):
        self.in_dim = in_dim
        self.out_dim = out_dim
        self.expansion = expansion
        self.downsampling = downsampling
        self.expanded_dim = out_dim * expansion
        self.apply_shortcut = self.in_dim != self.expanded_dim

        if self.apply_shortcut:
            # nn.Conv2d(in_dim, expanded_dim, k=1, stride=downsampling, bias=False)
            # kaiming_uniform(a=sqrt(5)) -> U(-1/sqrt(fan_in), +1/sqrt(fan_in)); fan_in = in_dim (1x1).
            bound = 1.0 / float(in_dim) ** 0.5
            self.w = jax.random.uniform(
                key, (self.expanded_dim, in_dim), jnp.float32, minval=-bound, maxval=bound
            )  # (Cexp, Cin)
            # nn.BatchNorm2d defaults: weight = 1, bias = 0
            self.gamma = jnp.ones((self.expanded_dim,), jnp.float32)
            self.beta = jnp.zeros((self.expanded_dim,), jnp.float32)
        else:
            self.w = None
            self.gamma = None
            self.beta = None

    # ------------------------------------------------------------------ #
    def _identity_path(self, x, n, c, h, w):
        # NOTE(perf): out = x + x is pure elementwise; in a full network letting XLA fuse 2*x into
        # the producer/consumer would avoid a dedicated read+write of x.  The Pallas kernel is kept
        # here so the module's forward is fully expressed in Pallas.
        limit, budget = _vmem_budget()
        hw = h * w
        rows = n * c
        total = rows * hw

        if rows % 8 == 0 and hw % 128 == 0:
            x2 = x.reshape(rows, hw)
            pad = 0
        else:
            # Pad the flat view to a multiple of 8*128 so every tile stays (8,128)-aligned,
            # lane-dense and double-buffered (no giant fallback block).
            padded = -(-total // 1024) * 1024
            pad = padded - total
            flat = x.reshape(total)
            if pad:
                flat = jnp.pad(flat, (0, pad))
            rows = padded // 128
            x2 = flat.reshape(rows, 128)
        cols = x2.shape[1]

        itemsize = x.dtype.itemsize
        per_blk = budget // 4  # in + out blocks, each double-buffered
        tc = _largest_aligned_divisor(cols, 128, max(128, per_blk // (8 * itemsize)))
        tr = _largest_aligned_divisor(rows, 8, max(8, per_blk // (tc * itemsize)))

        out2 = pl.pallas_call(
            _double_kernel,
            out_shape=jax.ShapeDtypeStruct(x2.shape, x.dtype),
            grid=(rows // tr, cols // tc),
            in_specs=[pl.BlockSpec((tr, tc), lambda i, j: (i, j))],
            out_specs=pl.BlockSpec((tr, tc), lambda i, j: (i, j)),
            compiler_params=pltpu.CompilerParams(
                dimension_semantics=("parallel", "parallel"),
                vmem_limit_bytes=limit,
            ),
        )(x2)

        if pad:
            out2 = out2.reshape(-1)[:total]
        return out2.reshape(n, c, h, w)

    # ------------------------------------------------------------------ #
    def __call__(self, x):
        # x: NCHW
        n, c, h, w = x.shape
        assert c == self.in_dim
        hw = h * w

        if not self.apply_shortcut:
            return self._identity_path(x, n, c, h, w)

        # Shortcut path.  With blocks == Identity the in-place add constrains the PyTorch module:
        # the residual must broadcast into x, i.e. expanded_dim == 1 and downsampling == 1.
        # TODO(synk): general (expanded_dim>1, stride>1) shortcuts are shape-incompatible in the
        # original PyTorch forward (blocks=Identity), so they are not implemented here.
        assert self.downsampling == 1, (
            "blocks=Identity in-place add requires matching spatial dims (downsampling=1)"
        )
        assert self.expanded_dim == 1, (
            "residual channel dim must broadcast into x's channel dim (out_dim*expansion == 1)"
        )

        limit, budget = _vmem_budget()

        # Free row-major reshape: channels on sublanes, spatial on lanes.  Zero-pad spatial to a
        # multiple of 128 (padding contributes 0 to sum and sumsq; count uses the true size).
        x3 = x.reshape(n, c, hw)
        hw_p = ((hw + 127) // 128) * 128
        if hw_p != hw:
            x3 = jnp.pad(x3, ((0, 0), (0, 0), (0, hw_p - hw)))
        w_col = self.w.reshape(c, 1)  # (Cin, 1)

        # Pass-1 tile: only x is double-buffered; two (1, th1) f32 scratches pad to 8 sublanes
        # -> bytes ~ th1 * (8*c + 64).  Pass-2 tile: x + out double-buffered -> 16*c*th2 bytes.
        th1 = _largest_aligned_divisor(hw_p, 128, max(128, budget // (8 * c + 64)))
        th2 = _largest_aligned_divisor(hw_p, 128, max(128, budget // (16 * c)))

        w_spec = pl.BlockSpec((c, 1), lambda i, j: (0, 0))
        stat_spec = pl.BlockSpec((None, 1, 1), lambda i, j: (i, 0, 0))

        # ---- Pass 1: per-sample batch statistics of the 1x1-conv output ----
        s_per, sq_per = pl.pallas_call(
            _bn_stats_kernel,
            out_shape=(
                jax.ShapeDtypeStruct((n, 1, 1), jnp.float32),
                jax.ShapeDtypeStruct((n, 1, 1), jnp.float32),
            ),
            grid=(n, hw_p // th1),
            in_specs=[pl.BlockSpec((None, c, th1), lambda i, j: (i, 0, j)), w_spec],
            out_specs=(stat_spec, stat_spec),
            scratch_shapes=[
                pltpu.VMEM((1, th1), jnp.float32),
                pltpu.VMEM((1, th1), jnp.float32),
            ],
            compiler_params=pltpu.CompilerParams(
                dimension_semantics=("parallel", "arbitrary"),
                vmem_limit_bytes=limit,
            ),
        )(x3, w_col)

        # Fold BN (training-mode batch stats, biased variance) into the conv weight + scalar bias.
        # Per-lane + per-sample f32 partials reduced here keep the E[y^2]-E[y]^2 form reasonably
        # conditioned; clamp guards tiny negative variance from residual cancellation.
        count = float(n * hw)  # true element count (excludes zero padding)
        s = jnp.sum(s_per, dtype=jnp.float32)
        sq = jnp.sum(sq_per, dtype=jnp.float32)
        mean = s / count
        var = jnp.maximum(sq / count - mean * mean, 0.0)
        inv_std = lax.rsqrt(var + _BN_EPS)
        scale = self.gamma[0] * inv_std                       # scalar (Cexp == 1)
        shift = self.beta[0] - mean * scale                   # scalar
        w_scaled = w_col * scale                              # (Cin, 1)
        shift_s = jnp.reshape(shift, (1,)).astype(jnp.float32)  # (1,) scalar in SMEM

        # ---- Pass 2: out = x + x.w_scaled + shift, tiled and fully parallel ----
        x_spec2 = pl.BlockSpec((None, c, th2), lambda i, j: (i, 0, j))
        out3 = pl.pallas_call(
            _shortcut_apply_kernel,
            out_shape=jax.ShapeDtypeStruct((n, c, hw_p), x.dtype),
            grid=(n, hw_p // th2),
            in_specs=[
                pl.BlockSpec(memory_space=pltpu.MemorySpace.SMEM),
                x_spec2,
                w_spec,
            ],
            out_specs=x_spec2,
            compiler_params=pltpu.CompilerParams(
                dimension_semantics=("parallel", "parallel"),
                vmem_limit_bytes=limit,
            ),
        )(shift_s, x3, w_scaled)

        if hw_p != hw:
            out3 = out3[:, :, :hw]
        return out3.reshape(n, c, h, w)

    # Pure-JAX reference (same math) for verification.
    def reference(self, x):
        if not self.apply_shortcut:
            return x + x
        ds = self.downsampling
        xs = x[:, :, ::ds, ::ds]
        y = jnp.einsum("nchw,oc->nohw", xs, self.w)
        mean = jnp.mean(y, axis=(0, 2, 3), keepdims=True)
        var = jnp.mean((y - mean) ** 2, axis=(0, 2, 3), keepdims=True)
        y = (y - mean) / jnp.sqrt(var + _BN_EPS)
        y = y * self.gamma.reshape(1, -1, 1, 1) + self.beta.reshape(1, -1, 1, 1)
        return x + y


# ---------------------------------------------------------------------------
# Demo
# ---------------------------------------------------------------------------
if __name__ == "__main__":
    key = jax.random.PRNGKey(0)
    kx, kw1 = jax.random.split(key)

    # NCHW input, small shapes
    x = jax.random.normal(kx, (2, 4, 16, 16), dtype=jnp.float32)

    # Case 1: shortcut branch active (in_dim != out_dim*expansion).  With blocks == Identity the
    # residual must broadcast over channels, so out_dim*expansion == 1.
    blk_shortcut = ResidualBlockPallas(in_dim=4, out_dim=1, expansion=1, downsampling=1, key=kw1)
    out1 = jax.block_until_ready(blk_shortcut(x))
    ref1 = blk_shortcut.reference(x)
    assert out1.shape == x.shape
    assert jnp.allclose(out1, ref1, atol=1e-4, rtol=1e-4), "shortcut-path mismatch"

    # Case 2: identity shortcut (in_dim == out_dim*expansion) -> out = 2*x.
    blk_identity = ResidualBlockPallas(in_dim=4, out_dim=4, expansion=1, downsampling=1, key=kw1)
    out2 = jax.block_until_ready(blk_identity(x))
    assert jnp.allclose(out2, 2.0 * x, atol=1e-6), "identity-path mismatch"

    # Case 3: non-(8,128)-aligned spatial dims exercise the padding path (7x7 feature map).
    x_odd = jax.random.normal(kx, (2, 4, 7, 7), dtype=jnp.float32)
    blk_odd = ResidualBlockPallas(in_dim=4, out_dim=1, expansion=1, downsampling=1, key=kw1)
    out3 = jax.block_until_ready(blk_odd(x_odd))
    assert jnp.allclose(out3, blk_odd.reference(x_odd), atol=1e-4, rtol=1e-4), "padded-path mismatch"

    print("KERNEL_OK")
</pallas_src>

<mosaic_0001>
module attributes {stable_mosaic.version = 11 : i64} {
  func.func @_bn_stats_kernel(%arg0: i32, %arg1: i32, %arg2: memref<1x4x256xf32, #tpu.memory_space<vmem>>, %arg3: memref<4x1xf32, #tpu.memory_space<vmem>>, %arg4: memref<1x1x1xf32, #tpu.memory_space<vmem>>, %arg5: memref<1x1x1xf32, #tpu.memory_space<vmem>>, %arg6: memref<1x256xf32, #tpu.memory_space<vmem>>, %arg7: memref<1x256xf32, #tpu.memory_space<vmem>>) attributes {dimension_semantics = [#tpu.dimension_semantics<parallel>, #tpu.dimension_semantics<arbitrary>], iteration_bounds = array<i64: 2, 1>, scalar_prefetch = 0 : i64, scratch_operands = 2 : i64, tpu.core_type = #tpu.core_type<tc>, window_params = [{transform_indices = @transform_0, window_bounds = array<i64: 1, 4, 256>}, {pipeline_mode = #tpu.pipeline_mode<synchronous>, transform_indices = @transform_1, window_bounds = array<i64: 4, 1>}, {transform_indices = @transform_2, window_bounds = array<i64: 1, 1, 1>}, {transform_indices = @transform_3, window_bounds = array<i64: 1, 1, 1>}]} {
    %c0_i32 = arith.constant 0 : i32
    %0 = arith.cmpi eq, %arg1, %c0_i32 : i32
    %1 = arith.extui %0 : i1 to i32
    %c0_i32_0 = arith.constant 0 : i32
    %2 = arith.cmpi ne, %1, %c0_i32_0 : i32
    scf.if %2 {
      %cst_15 = arith.constant 0.000000e+00 : f32
      %20 = vector.broadcast %cst_15 : f32 to vector<1x256xf32>
      %c0_16 = arith.constant 0 : index
      %c0_17 = arith.constant 0 : index
      %21 = vector.load %arg6[%c0_16, %c0_17] : memref<1x256xf32, #tpu.memory_space<vmem>>, vector<1x256xf32>
      tpu.vector_store %arg6[%c0_16, %c0_17], %20 {strides = array<i32>} : memref<1x256xf32, #tpu.memory_space<vmem>>, vector<1x256xf32>,
      %cst_18 = arith.constant 0.000000e+00 : f32
      %22 = vector.broadcast %cst_18 : f32 to vector<1x256xf32>
      %c0_19 = arith.constant 0 : index
      %c0_20 = arith.constant 0 : index
      %23 = vector.load %arg7[%c0_19, %c0_20] : memref<1x256xf32, #tpu.memory_space<vmem>>, vector<1x256xf32>
      tpu.vector_store %arg7[%c0_19, %c0_20], %22 {strides = array<i32>} : memref<1x256xf32, #tpu.memory_space<vmem>>, vector<1x256xf32>,
    } else {
    }
    %c0 = arith.constant 0 : index
    %c0_1 = arith.constant 0 : index
    %c0_2 = arith.constant 0 : index
    %3 = vector.load %arg2[%c0, %c0_1, %c0_2] : memref<1x4x256xf32, #tpu.memory_space<vmem>>, vector<1x4x256xf32>
    %4 = vector.shape_cast %3 : vector<1x4x256xf32> to vector<4x256xf32>
    %c0_3 = arith.constant 0 : index
    %c0_4 = arith.constant 0 : index
    %5 = vector.load %arg3[%c0_3, %c0_4] : memref<4x1xf32, #tpu.memory_space<vmem>>, vector<4x1xf32>
    %6 = vector.broadcast %5 : vector<4x1xf32> to vector<4x256xf32>
    %7 = arith.mulf %4, %6 : vector<4x256xf32>
    %cst = arith.constant dense<0.000000e+00> : vector<256xf32>
    %8 = vector.multi_reduction <add>, %7, %cst [0] : vector<4x256xf32> to vector<256xf32>
    %9 = vector.shape_cast %8 : vector<256xf32> to vector<1x256xf32>
    %c0_5 = arith.constant 0 : index
    %c0_6 = arith.constant 0 : index
    %10 = vector.load %arg6[%c0_5, %c0_6] : memref<1x256xf32, #tpu.memory_space<vmem>>, vector<1x256xf32>
    %11 = arith.addf %10, %9 : vector<1x256xf32>
    %c0_7 = arith.constant 0 : index
    %c0_8 = arith.constant 0 : index
    %12 = vector.load %arg6[%c0_7, %c0_8] : memref<1x256xf32, #tpu.memory_space<vmem>>, vector<1x256xf32>
    tpu.vector_store %arg6[%c0_7, %c0_8], %11 {strides = array<i32>} : memref<1x256xf32, #tpu.memory_space<vmem>>, vector<1x256xf32>,
    %c0_9 = arith.constant 0 : index
    %c0_10 = arith.constant 0 : index
    %13 = vector.load %arg7[%c0_9, %c0_10] : memref<1x256xf32, #tpu.memory_space<vmem>>, vector<1x256xf32>
    %14 = arith.mulf %9, %9 : vector<1x256xf32>
    %15 = arith.addf %13, %14 : vector<1x256xf32>
    %c0_11 = arith.constant 0 : index
    %c0_12 = arith.constant 0 : index
    %16 = vector.load %arg7[%c0_11, %c0_12] : memref<1x256xf32, #tpu.memory_space<vmem>>, vector<1x256xf32>
    tpu.vector_store %arg7[%c0_11, %c0_12], %15 {strides = array<i32>} : memref<1x256xf32, #tpu.memory_space<vmem>>, vector<1x256xf32>,
    %c0_i32_13 = arith.constant 0 : i32
    %17 = arith.cmpi eq, %arg1, %c0_i32_13 : i32
    %18 = arith.extui %17 : i1 to i32
    %c0_i32_14 = arith.constant 0 : i32
    %19 = arith.cmpi ne, %18, %c0_i32_14 : i32
    scf.if %19 {
      %c0_15 = arith.constant 0 : index
      %c0_16 = arith.constant 0 : index
      %20 = vector.load %arg6[%c0_15, %c0_16] : memref<1x256xf32, #tpu.memory_space<vmem>>, vector<1x256xf32>
      %cst_17 = arith.constant dense<0.000000e+00> : vector<1xf32>
      %21 = vector.multi_reduction <add>, %20, %cst_17 [1] : vector<1x256xf32> to vector<1xf32>
      %22 = vector.shape_cast %21 : vector<1xf32> to vector<1x1xf32>
      %c0_18 = arith.constant 0 : index
      %c0_19 = arith.constant 0 : index
      %c0_20 = arith.constant 0 : index
      %23 = vector.load %arg4[%c0_18, %c0_19, %c0_20] : memref<1x1x1xf32, #tpu.memory_space<vmem>>, vector<1x1x1xf32>
      %24 = vector.shape_cast %23 : vector<1x1x1xf32> to vector<1x1xf32>
      %25 = vector.shape_cast %22 : vector<1x1xf32> to vector<1x1x1xf32>
      tpu.vector_store %arg4[%c0_18, %c0_19, %c0_20], %25 {strides = array<i32>} : memref<1x1x1xf32, #tpu.memory_space<vmem>>, vector<1x1x1xf32>,
      %c0_21 = arith.constant 0 : index
      %c0_22 = arith.constant 0 : index
      %26 = vector.load %arg7[%c0_21, %c0_22] : memref<1x256xf32, #tpu.memory_space<vmem>>, vector<1x256xf32>
      %cst_23 = arith.constant dense<0.000000e+00> : vector<1xf32>
      %27 = vector.multi_reduction <add>, %26, %cst_23 [1] : vector<1x256xf32> to vector<1xf32>
      %28 = vector.shape_cast %27 : vector<1xf32> to vector<1x1xf32>
      %c0_24 = arith.constant 0 : index
      %c0_25 = arith.constant 0 : index
      %c0_26 = arith.constant 0 : index
      %29 = vector.load %arg5[%c0_24, %c0_25, %c0_26] : memref<1x1x1xf32, #tpu.memory_space<vmem>>, vector<1x1x1xf32>
      %30 = vector.shape_cast %29 : vector<1x1x1xf32> to vector<1x1xf32>
      %31 = vector.shape_cast %28 : vector<1x1xf32> to vector<1x1x1xf32>
      tpu.vector_store %arg5[%c0_24, %c0_25, %c0_26], %31 {strides = array<i32>} : memref<1x1x1xf32, #tpu.memory_space<vmem>>, vector<1x1x1xf32>,
    } else {
    }
    return
  }
  func.func @transform_0(%arg0: i32, %arg1: i32) -> (i32, i32, i32) {
    %c0_i32 = arith.constant 0 : i32
    %c0_i32_0 = arith.constant 0 : i32
    return %arg0, %c0_i32, %arg1 : i32, i32, i32
  }
  func.func @transform_1(%arg0: i32, %arg1: i32) -> (i32, i32) {
    %c0_i32 = arith.constant 0 : i32
    %c0_i32_0 = arith.constant 0 : i32
    %c0_i32_1 = arith.constant 0 : i32
    return %c0_i32, %c0_i32_0 : i32, i32
  }
  func.func @transform_2(%arg0: i32, %arg1: i32) -> (i32, i32, i32) {
    %c0_i32 = arith.constant 0 : i32
    %c0_i32_0 = arith.constant 0 : i32
    %c0_i32_1 = arith.constant 0 : i32
    return %arg0, %c0_i32, %c0_i32_0 : i32, i32, i32
  }
  func.func @transform_3(%arg0: i32, %arg1: i32) -> (i32, i32, i32) {
    %c0_i32 = arith.constant 0 : i32
    %c0_i32_0 = arith.constant 0 : i32
    %c0_i32_1 = arith.constant 0 : i32
    return %arg0, %c0_i32, %c0_i32_0 : i32, i32, i32
  }
}

</mosaic_0001>

<bundles_post_ra>
// kernel: tpu_custom_call.1
= control target key start
LH: loop header
LB: loop body
LE: loop exit
PB: predicated region body
PF: predicated region fallthrough
CT: control target
= control target key end

     0   :  { %9 = vsyncpa [#allocation5], 0  ;;  %s690_s0 = inlined_call_operand.hbm [shape: f32[2,4,256], index: 0, kind: input, shape index: {}]   ;;  %s691_s1 = inlined_call_operand.vmem [shape: f32[4,1], index: 1, kind: input, shape index: {}]   ;;  %s692_s2 = inlined_call_operand.vmem [shape: f32[2,1,1], index: 2, kind: output, shape index: {0}]   ;;  %s693_s3 = inlined_call_operand.vmem [shape: f32[2,1,1], index: 3, kind: output, shape index: {1}]  }
   0x1   :  { %11 = vsyncpa [#allocation5 + $0x1], 0  ;;  %s578_s12 = smov 0   ;;  %s580_s13 = smov 0  }
   0x2   :  { %s582_s14 = smov 0   ;;  %s584_s15 = smov 0  }
   0x3   :  { %s586_s16 = smov 0   ;;  %s588_s17 = smov 0  }
   0x4 LB: > { %s402_s18 = sadd.s32 4294967295, %s553_s17   ;;  %s29_s19 = sadd.s32 1, %s549_s16  ;;  %s553_s17 = sphi %s588_s17, %s17_s17   ;;  %s549_s16 = sphi %s586_s16, %s702_s16   ;;  %s545_s15 = sphi %s584_s15, %s701_s15   ;;  %s541_s14 = sphi %s582_s14, %s700_s14   ;;  %s537_s13 = sphi %s580_s13, %s699_s13   ;;  %s533_s12 = sphi %s578_s12, %s698_s12  }
   0x5   : > { %p31_p0 = scmp.ge.s32.totalorder %s29_s19, 2  ;;  %s38_s20 = sadd.s32 1, %s541_s14 }
   0x6   : > { %p45_p1 = scmp.ne.s32.totalorder %s541_s14, %s537_s13  ;;  %p46_p2 = scmp.eq.s32.totalorder %s553_s17, 0 }
   0x7   : > { %s704_s19 = smov (%p31_p0, %s29_s19), 0  ;;  %p51_p4 = scmp.ne.s32.totalorder %s537_s13, %s533_s12 }
   0x8   : > { %p614_p3 = por %p46_p2, %p45_p1  ;;  %s33_s22 = ssub.s32 %s549_s16, %s704_s19 }
   0x9   : > { %p52_p5 = scmp.eq.s32.totalorder %s402_s18, 0  ;;  %p36_p6 = scmp.eq.s32.totalorder %s33_s22, 0 }
   0xa   : > { %p420_p8 = scmp.lt.s32.totalorder %s553_s17, 2  ;;  %s151_s25 = sand.u32 1, %s541_s14  }
   0xb   : > { %p621_p7 = por %p52_p5, %p51_p4  ;;  %s413_s26 = sshll.u32 %s549_s16, 3 }
   0xc   : > { %s627_s24 = scalar_select %p36_p6, %s541_s14, %s38_s20  }
   0xd   : > { %s406_s27 = sshll.u32 %s151_s25, 3  ;;  %s162_s30 = scalar_lea.hbm %s690_s0, %s413_s26 }
   0xe   : > { %s164_s4 = sshll.u32 %s162_s30, 4  ;;  %s155_s5 = scalar_lea.vmem [#allocation4], %s406_s27  ;;  %s165_s4 = int_to_ptr.hbm [resolvable:$true] %s164_s4 }
   0xf   : > { %s166_s6 = sshll.u32 %s155_s5, 4  ;;  %p417_p9 = pnand %p420_p8, %p614_p3  ;;  %s167_s6 = int_to_ptr.vmem [resolvable:$true] %s166_s6 }
  0x10   : > { %p409_p10 = scmp.ge.s32.totalorder %s553_s17, 1  ;;  %p171_p11 = scmp.lt.s32.totalorder %s553_s17, 3 }
  0x11   : > { %s152_s7 = scalar_lea.sflag [#allocation5], %s151_s25 }
  0x12   : > { %419 = dma.hbm_to_vmem [thread:$0]  (!%p417_p9), %s165_s4, 128, %s167_s6, %s152_s7  }
  0x13   : > { %p172_p12 = pnand %p409_p10, %p171_p11 }
  0x14   : > { %s177_s8 = sand.u32 (!%p172_p12), 1, %s537_s13  }
  0x15   : > { %175 = sbr.rel (%p172_p12) target bundleno = 306 (0x132), region = 28  ;;  %s410_s9 = sshll.u32 (!%p172_p12), %s177_s8, 3 }
  0x16   : > { %s178_s10 = scalar_lea.sflag (!%p172_p12), [#allocation5], %s177_s8  ;;  %s181_s11 = scalar_lea.vmem (!%p172_p12), [#allocation4], %s410_s9 }
  0x1a   : > { %528 = dma.done.wait (%p621_p7), %s178_s10, 128  }
  0x1b   : > { %530 = vsyncadd (%p621_p7), %s178_s10, 4294967168  ;;  %v555_v0 = vmov 0   ;;  %v224_v1 = vld [vmem:[%s691_s1] sm:$0xf]  ;;  %v217_v2 = vlaneseq  ;;  %v556_v4 = vmov 0.0   ;;  %v223_v9 = vld [vmem:[%s181_s11] sm:$0xff] }
  0x1c   : > { %472 = vset.pattern.permute.xlu0 %v555_v0  ;;  %v557_v5 = vmov 839922192   ;;  %vm241_vm1 = vcmask 1043456   ;;  %vm260_vm2 = vcmask 1040384   ;;  %p207_p13 = scmp.lt.s32.totalorder %s545_s15, 1  ;;  %vm293_vm3 = vcmask 0  }
  0x1d   : > { %227 = vperm.xlu0 %472, %v224_v1   ;;  %vm646_vm0 = vcmp.lt.s32.totalorder %v217_v2, 256  ;;  %v230_v6 = vunpack.c.l.s4 %v557_v5 }
  0x1e   : > { %221 = vst.msk [vmem:[#allocation2] sm:$0x3] %vm646_vm0, %v556_v4  ;;  %s706_s15 = smov (!%p207_p13, %s545_s15), 1 }
  0x1f   : > { %222 = vst.msk [vmem:[#allocation3] sm:$0x3] %vm646_vm0, %v556_v4  ;;  %v231_v7 = vunpack.c.0.s8 %v230_v6  ;;  %s209_s22 = scalar_lea.vmem %s692_s2, %s706_s15  ;;  %s212_s26 = scalar_lea.vmem %s693_s3, %s706_s15 }
  0x25   : > { %v256_v28 = vld [vmem:[#allocation2] sm:$0x3] }
  0x26   : > { %v269_v32 = vld [vmem:[#allocation3] sm:$0x3] }
  0x8f   : > { %v228_v8 = vpop.permute.xlu0 %227 }
  0x90   : > { %v232_v10 = vperm.slane %v228_v8, %v231_v7 }
  0x92   : > { %v234_v11 = vmul.f32 %v232_v10, %v223_v9 }
  0x94   : > { %236 = vst [vmem:[#allocation1] ss:$2 sm:$0xff] %v234_v11 }
  0x9b   : > { %v237_v12 = vld.sshfl [vmem:[#allocation1] sm:$0xff pattern:$0x75316420]  ;;  %v238_v13 = vld.sshfl [vmem:[#allocation1 + $0x8] sm:$0xff pattern:$0x75316420] }
  0x9c   : > { %v242_v14 = vsel %vm241_vm1, %v237_v12, 0.0  ;;  %v249_v15 = vsel %vm241_vm1, %v238_v13, 0.0 }
  0x9d   : > { %v243_v16 = vrot.slane %v242_v14, 4  ;;  %v250_v17 = vrot.slane %v249_v15, 4 }
  0x9f   : > { %v244_v18 = vadd.f32 %v243_v16, %v242_v14  ;;  %v251_v19 = vadd.f32 %v250_v17, %v249_v15 }
  0xa1   : > { %v245_v20 = vrot.slane %v244_v18, 2  ;;  %v252_v21 = vrot.slane %v251_v19, 2 }
  0xa3   : > { %v246_v22 = vadd.f32 %v245_v20, %v244_v18  ;;  %v253_v23 = vadd.f32 %v252_v21, %v251_v19 }
  0xa5   : > { %v247_v24 = vrot.slane %v246_v22, 1  ;;  %v254_v25 = vrot.slane %v253_v23, 1 }
  0xa7   : > { %v248_v26 = vadd.f32 %v247_v24, %v246_v22  ;;  %v255_v27 = vadd.f32 %v254_v25, %v253_v23 }
  0xa9   : > { %v259_v29 = vrot.slane %v255_v27, 7  ;;  %v271_v30 = vmul.f32 %v255_v27, %v255_v27  ;;  %v270_v33 = vmul.f32 %v248_v26, %v248_v26 }
  0xab   : > { %v261_v31 = vsel %vm260_vm2, %v248_v26, %v259_v29  ;;  %v274_v34 = vrot.slane %v271_v30, 7 }
  0xac   : > { %v263_v35 = vadd.f32 %v261_v31, %v256_v28 }
  0xad   : > { %v275_v36 = vsel %vm260_vm2, %v270_v33, %v274_v34 }
  0xae   : > { %268 = vst.msk [vmem:[#allocation2] sm:$0x3] %vm646_vm0, %v263_v35  ;;  %v277_v37 = vadd.f32 %v275_v36, %v269_v32 }
  0xb0   : > { %278 = vst.msk [vmem:[#allocation3] sm:$0x3] %vm646_vm0, %v277_v37 }
  0xb5   : > { %v282_v38 = vld [vmem:[#allocation2] sm:$0x3] }
  0xb6   : > { %v284_v39 = vperm.slane %v282_v38, 0  ;;  %v285_v40 = vperm.slane %v282_v38, 1 }
  0xb7   : > { %v295_v41 = vld [vmem:[#allocation3] sm:$0x3] }
  0xb8   : > { %v288_v42 = vsel %vm260_vm2, %v284_v39, 0.0  ;;  %v289_v43 = vsel %vm260_vm2, %v285_v40, 0.0  ;;  %v297_v44 = vperm.slane %v295_v41, 0  ;;  %v298_v45 = vperm.slane %v295_v41, 1 }
  0xb9   : > { %v290_v46 = vadd.f32 %v289_v43, %v288_v42 }
  0xba   : > { %v301_v47 = vsel %vm260_vm2, %v297_v44, 0.0  ;;  %v302_v48 = vsel %vm260_vm2, %v298_v45, 0.0 }
  0xbb   : > { %291 = vadd.xlane.f32.xlu0 %v290_v46  ;;  %v303_v49 = vadd.f32 %v302_v48, %v301_v47 }
  0xbd   : > { %304 = vadd.xlane.f32.xlu1 %v303_v49 }
 0x12e   : > { %v292_v50 = vpop.xlane.xlu0 %291 }
 0x12f   : > { %294 = vst.msk [vmem:[%s209_s22] sm:$0x1] %vm293_vm3, %v292_v50 }
 0x130   : > { %v305_v51 = vpop.xlane.xlu1 %304 }
 0x131   : > { %306 = vst.msk [vmem:[%s212_s26] sm:$0x1] %vm293_vm3, %v305_v51 }
 0x132 PF: > { %s17_s17 = sadd.s32 1, %s553_s17   ;;  %s698_s12 = smov %s537_s13 }
 0x133   : > { %p14_p0 = scmp.ge.s32.totalorder %s17_s17, 4   ;;  %s699_s13 = smov %s541_s14 }
 0x134   : > { %s700_s14 = smov %s627_s24  ;;  %s701_s15 = smov %s549_s16 }
 0x135   : > { %s702_s16 = smov %s704_s19  ;;  %16 = sbr.rel (!%p14_p0) target bundleno = 4 (0x4), region = 88 }
 0x13a   :  { %336 = vsyncpa [#allocation5], 1 }
 0x13b   :  { %338 = vsyncpa [#allocation5 + $0x1], 1 }

</bundles_post_ra>
